<compile_context>
chip_gen: v7x
topology: tpu7x:2x2x1
jax: 0.10.0
libtpu: 0.0.40
codegen_flags: <defaults>
</compile_context>

<pallas_src>
import jax
import jax.numpy as jnp
from jax.experimental import pallas as pl
from jax.experimental.pallas import tpu as pltpu


def _round_up(n, m):
    return ((n + m - 1) // m) * m


def _pad2(a, rows, cols, dtype):
    """Cast to `dtype` and zero-pad a 2-D array up to (rows, cols)."""
    a = a.astype(dtype)
    return jnp.pad(a, ((0, rows - a.shape[0]), (0, cols - a.shape[1])))


def grader_decoder_kernel(x_ref, w1_ref, b1_ref, w2_ref, b2_ref, w3_ref, b3_ref, o_ref):
    """Fused MLP forward on one batch tile: relu(xW1+b1) -> relu(.W2+b2) -> tanh(.W3+b3).

    Matmul operands are bf16 (MXU), accumulation and all elementwise math are f32.
    """
    x = x_ref[...]
    h1 = jnp.dot(x, w1_ref[...], preferred_element_type=jnp.float32) + b1_ref[...]
    h1 = jnp.maximum(h1, 0.0)                                      # nonlin = F.relu
    h2 = jnp.dot(h1.astype(w2_ref.dtype), w2_ref[...],
                 preferred_element_type=jnp.float32) + b2_ref[...]
    h2 = jnp.maximum(h2, 0.0)                                      # nonlin = F.relu
    out = jnp.dot(h2.astype(w3_ref.dtype), w3_ref[...],
                  preferred_element_type=jnp.float32) + b3_ref[...]
    o_ref[...] = jnp.tanh(out).astype(o_ref.dtype)                 # constrain_out -> tanh


def _plan_batch_tiling(batch, input_dim, h_pad, o_pad, *, budget_bytes, max_tile):
    """Pick (tile_b, b_pad, n_tiles) under a VMEM budget.

    Per-tile VMEM footprint accounted:
      * X tile, bf16, double-buffered:   2 * tb * input_dim * 2 B
      * out tile, bf16, double-buffered: 2 * tb * o_pad * 2 B
      * f32 intermediates h1/h2 spilled by Mosaic to VMEM scratch:
                                         2 * tb * h_pad * 4 B
      * resident weights/biases, single-buffered (Buffered(1)), bf16/f32.
    """
    weight_bytes = (input_dim * h_pad + h_pad * h_pad + h_pad * o_pad) * 2 \
                   + (2 * h_pad + o_pad) * 4
    per_row = 2 * input_dim * 2 + 2 * o_pad * 2 + 2 * h_pad * 4
    avail = max(budget_bytes - weight_bytes, per_row * 16)
    tb_cap = min(max_tile, max(16, (avail // per_row) // 16 * 16))

    b16 = _round_up(batch, 16)
    # At least enough tiles to respect the VMEM cap; force >=2 grid steps for
    # batch >= 32 so v7x's two TensorCores both get work (no-op on v5e/v6e).
    n_tiles = max(pl.cdiv(b16, tb_cap), 2 if b16 >= 32 else 1)
    while True:
        tb = _round_up(pl.cdiv(b16, n_tiles), 16)
        if tb <= tb_cap or tb == 16:
            break
        n_tiles += 1
    b_pad = n_tiles * tb
    return tb, b_pad, n_tiles, weight_bytes, per_row


def grader_decoder(x, w1, b1, w2, b2, w3, b3, *,
                   matmul_dtype=jnp.bfloat16,
                   out_dtype=jnp.bfloat16,
                   vmem_budget_bytes=40 * 1024 * 1024,
                   max_tile=4096):
    """Wrapper: pad to lane-dense shapes, grid over batch, weights VMEM-resident.

    NOTE: at tiny demo shapes (8x32 -> 8) this is pure launch/DMA overhead and
    plain XLA fusion would match it; the design pays off once batch is large.
    """
    batch, input_dim = x.shape
    hidden_dim = w1.shape[1]
    out_dim = w3.shape[1]

    # Lane-dense padding of feature dims. Hidden dim widens to 256 multiples
    # only once it is large enough to be MXU-bound on v6e/v7x (2x256x256 MXU);
    # output stays at 128 multiples to keep the HBM writeback minimal.
    h_pad = _round_up(hidden_dim, 256) if hidden_dim >= 1024 else _round_up(hidden_dim, 128)
    o_pad = _round_up(out_dim, 128)

    tb, b_pad, n_tiles, weight_bytes, per_row = _plan_batch_tiling(
        batch, input_dim, h_pad, o_pad,
        budget_bytes=vmem_budget_bytes, max_tile=max_tile)

    # Pad / cast operands.  Zero padding is exact: padded hidden units get
    # zero weight columns + zero bias -> relu(0) = 0 -> no downstream effect;
    # padded output columns are tanh(0) = 0 and are sliced off below.
    x_p = _pad2(x, b_pad, input_dim, matmul_dtype)
    w1_p = _pad2(w1, input_dim, h_pad, matmul_dtype)
    b1_p = _pad2(b1, 1, h_pad, jnp.float32)
    w2_p = _pad2(w2, h_pad, h_pad, matmul_dtype)
    b2_p = _pad2(b2, 1, h_pad, jnp.float32)
    w3_p = _pad2(w3, h_pad, o_pad, matmul_dtype)
    b3_p = _pad2(b3, 1, o_pad, jnp.float32)

    resident = lambda i: (0, 0)   # same block every step -> stays in VMEM
    single = pl.Buffered(1)       # resident operands: no double-buffering

    # Explicit VMEM limit sized from the actual footprint with headroom,
    # kept well under v7x's 64 MiB physical VMEM.
    footprint = weight_bytes + per_row * tb
    vmem_limit = min(56 * 1024 * 1024, _round_up(footprint + (4 << 20), 1 << 20))

    out_p = pl.pallas_call(
        grader_decoder_kernel,
        out_shape=jax.ShapeDtypeStruct((b_pad, o_pad), out_dtype),
        grid=(n_tiles,),
        in_specs=[
            pl.BlockSpec((tb, input_dim), lambda i: (i, 0)),             # X (tiled)
            pl.BlockSpec((input_dim, h_pad), resident, pipeline_mode=single),  # W1
            pl.BlockSpec((1, h_pad), resident, pipeline_mode=single),          # b1
            pl.BlockSpec((h_pad, h_pad), resident, pipeline_mode=single),       # W2
            pl.BlockSpec((1, h_pad), resident, pipeline_mode=single),          # b2
            pl.BlockSpec((h_pad, o_pad), resident, pipeline_mode=single),       # W3
            pl.BlockSpec((1, o_pad), resident, pipeline_mode=single),          # b3
        ],
        out_specs=pl.BlockSpec((tb, o_pad), lambda i: (i, 0)),
        compiler_params=pltpu.CompilerParams(
            dimension_semantics=("parallel",),   # shard batch grid over v7x's 2 TCs
            vmem_limit_bytes=vmem_limit,
        ),
    )(x_p, w1_p, b1_p, w2_p, b2_p, w3_p, b3_p)

    # Slice away batch + lane padding.
    return out_p[:batch, :out_dim]


def init_params(key, input_dim, out_dim, hidden_dim):
    """Deterministic init mimicking nn.Linear defaults; fc3 weight ~ U(-0.003, 0.003)
    to match constrain_out=True in the PyTorch module."""
    k1, k2, k3, k4, k5, k6 = jax.random.split(key, 6)

    def linear_init(kw, kb, fan_in, fan_out):
        bound = 1.0 / jnp.sqrt(fan_in)
        w = jax.random.uniform(kw, (fan_in, fan_out), jnp.float32, -bound, bound)
        b = jax.random.uniform(kb, (1, fan_out), jnp.float32, -bound, bound)
        return w, b

    w1, b1 = linear_init(k1, k2, input_dim, hidden_dim)
    w2, b2 = linear_init(k3, k4, hidden_dim, hidden_dim)
    # fc3: weight overridden by uniform_(-0.003, 0.003); bias keeps default init.
    w3 = jax.random.uniform(k5, (hidden_dim, out_dim), jnp.float32, -0.003, 0.003)
    b_bound = 1.0 / jnp.sqrt(hidden_dim)
    b3 = jax.random.uniform(k6, (1, out_dim), jnp.float32, -b_bound, b_bound)
    return w1, b1, w2, b2, w3, b3


if __name__ == "__main__":
    # Small shapes consistent with the module's forward: X is [batch, input_dim].
    batch, input_dim, hidden_dim, out_dim = 8, 32, 64, 8

    key = jax.random.PRNGKey(0)
    kx, kp = jax.random.split(key)
    x = jax.random.normal(kx, (batch, input_dim), jnp.float32)
    w1, b1, w2, b2, w3, b3 = init_params(kp, input_dim, out_dim, hidden_dim)

    out = grader_decoder(x, w1, b1, w2, b2, w3, b3)
    jax.block_until_ready(out)

    # Pure-JAX f32 reference (same semantics as the PyTorch forward).
    # Tolerance relaxed because matmul operands are fed to the MXU in bf16
    # (f32 accumulation) and the output is stored in bf16.
    h1 = jax.nn.relu(x @ w1 + b1)
    h2 = jax.nn.relu(h1 @ w2 + b2)
    ref = jnp.tanh(h2 @ w3 + b3)
    out_f32 = out.astype(jnp.float32)
    assert out.shape == (batch, out_dim)
    assert jnp.allclose(out_f32, ref, atol=3e-2, rtol=3e-2), (
        f"max abs err {jnp.max(jnp.abs(out_f32 - ref))}")

    print("KERNEL_OK")
</pallas_src>

<mosaic_0001>
module attributes {stable_mosaic.version = 11 : i64} {
  func.func @grader_decoder_kernel(%arg0: i32, %arg1: memref<16x32xbf16, #tpu.memory_space<vmem>>, %arg2: memref<32x128xbf16, #tpu.memory_space<vmem>>, %arg3: memref<1x128xf32, #tpu.memory_space<vmem>>, %arg4: memref<128x128xbf16, #tpu.memory_space<vmem>>, %arg5: memref<1x128xf32, #tpu.memory_space<vmem>>, %arg6: memref<128x128xbf16, #tpu.memory_space<vmem>>, %arg7: memref<1x128xf32, #tpu.memory_space<vmem>>, %arg8: memref<16x128xbf16, #tpu.memory_space<vmem>>) attributes {dimension_semantics = [#tpu.dimension_semantics<parallel>], iteration_bounds = array<i64: 1>, scalar_prefetch = 0 : i64, scratch_operands = 0 : i64, tpu.core_type = #tpu.core_type<tc>, window_params = [{transform_indices = @transform_0, window_bounds = array<i64: 16, 32>}, {pipeline_mode = #tpu.pipeline_mode<synchronous>, transform_indices = @transform_1, window_bounds = array<i64: 32, 128>}, {pipeline_mode = #tpu.pipeline_mode<synchronous>, transform_indices = @transform_2, window_bounds = array<i64: 1, 128>}, {pipeline_mode = #tpu.pipeline_mode<synchronous>, transform_indices = @transform_3, window_bounds = array<i64: 128, 128>}, {pipeline_mode = #tpu.pipeline_mode<synchronous>, transform_indices = @transform_4, window_bounds = array<i64: 1, 128>}, {pipeline_mode = #tpu.pipeline_mode<synchronous>, transform_indices = @transform_5, window_bounds = array<i64: 128, 128>}, {pipeline_mode = #tpu.pipeline_mode<synchronous>, transform_indices = @transform_6, window_bounds = array<i64: 1, 128>}, {transform_indices = @transform_7, window_bounds = array<i64: 16, 128>}]} {
    %c0 = arith.constant 0 : index
    %c0_0 = arith.constant 0 : index
    %0 = vector.load %arg1[%c0, %c0_0] : memref<16x32xbf16, #tpu.memory_space<vmem>>, vector<16x32xbf16>
    %c0_1 = arith.constant 0 : index
    %c0_2 = arith.constant 0 : index
    %1 = vector.load %arg2[%c0_1, %c0_2] : memref<32x128xbf16, #tpu.memory_space<vmem>>, vector<32x128xbf16>
    %cst = arith.constant dense<0.000000e+00> : vector<16x128xf32>
    %2 = tpu.matmul %0, %1, %cst {dimension_numbers = #tpu.dot_dimension_numbers<[1], [0], [0], [1], [0, 0, 1, 1], [], []>} : vector<16x32xbf16>, vector<32x128xbf16>, vector<16x128xf32> -> vector<16x128xf32>
    %c0_3 = arith.constant 0 : index
    %c0_4 = arith.constant 0 : index
    %3 = vector.load %arg3[%c0_3, %c0_4] : memref<1x128xf32, #tpu.memory_space<vmem>>, vector<1x128xf32>
    %4 = vector.broadcast %3 : vector<1x128xf32> to vector<16x128xf32>
    %5 = arith.addf %2, %4 : vector<16x128xf32>
    %cst_5 = arith.constant 0.000000e+00 : f32
    %6 = vector.broadcast %cst_5 : f32 to vector<16x128xf32>
    %7 = arith.maximumf %5, %6 : vector<16x128xf32>
    %8 = arith.truncf %7 : vector<16x128xf32> to vector<16x128xbf16>
    %c0_6 = arith.constant 0 : index
    %c0_7 = arith.constant 0 : index
    %9 = vector.load %arg4[%c0_6, %c0_7] : memref<128x128xbf16, #tpu.memory_space<vmem>>, vector<128x128xbf16>
    %cst_8 = arith.constant dense<0.000000e+00> : vector<16x128xf32>
    %10 = tpu.matmul %8, %9, %cst_8 {dimension_numbers = #tpu.dot_dimension_numbers<[1], [0], [0], [1], [0, 0, 1, 1], [], []>} : vector<16x128xbf16>, vector<128x128xbf16>, vector<16x128xf32> -> vector<16x128xf32>
    %c0_9 = arith.constant 0 : index
    %c0_10 = arith.constant 0 : index
    %11 = vector.load %arg5[%c0_9, %c0_10] : memref<1x128xf32, #tpu.memory_space<vmem>>, vector<1x128xf32>
    %12 = vector.broadcast %11 : vector<1x128xf32> to vector<16x128xf32>
    %13 = arith.addf %10, %12 : vector<16x128xf32>
    %cst_11 = arith.constant 0.000000e+00 : f32
    %14 = vector.broadcast %cst_11 : f32 to vector<16x128xf32>
    %15 = arith.maximumf %13, %14 : vector<16x128xf32>
    %16 = arith.truncf %15 : vector<16x128xf32> to vector<16x128xbf16>
    %c0_12 = arith.constant 0 : index
    %c0_13 = arith.constant 0 : index
    %17 = vector.load %arg6[%c0_12, %c0_13] : memref<128x128xbf16, #tpu.memory_space<vmem>>, vector<128x128xbf16>
    %cst_14 = arith.constant dense<0.000000e+00> : vector<16x128xf32>
    %18 = tpu.matmul %16, %17, %cst_14 {dimension_numbers = #tpu.dot_dimension_numbers<[1], [0], [0], [1], [0, 0, 1, 1], [], []>} : vector<16x128xbf16>, vector<128x128xbf16>, vector<16x128xf32> -> vector<16x128xf32>
    %c0_15 = arith.constant 0 : index
    %c0_16 = arith.constant 0 : index
    %19 = vector.load %arg7[%c0_15, %c0_16] : memref<1x128xf32, #tpu.memory_space<vmem>>, vector<1x128xf32>
    %20 = vector.broadcast %19 : vector<1x128xf32> to vector<16x128xf32>
    %21 = arith.addf %18, %20 : vector<16x128xf32>
    %22 = math.tanh %21 : vector<16x128xf32>
    %23 = arith.truncf %22 : vector<16x128xf32> to vector<16x128xbf16>
    %c0_17 = arith.constant 0 : index
    %c0_18 = arith.constant 0 : index
    %24 = vector.load %arg8[%c0_17, %c0_18] : memref<16x128xbf16, #tpu.memory_space<vmem>>, vector<16x128xbf16>
    tpu.vector_store %arg8[%c0_17, %c0_18], %23 {strides = array<i32>} : memref<16x128xbf16, #tpu.memory_space<vmem>>, vector<16x128xbf16>,
    return
  }
  func.func @transform_0(%arg0: i32) -> (i32, i32) {
    %c0_i32 = arith.constant 0 : i32
    %c0_i32_0 = arith.constant 0 : i32
    return %arg0, %c0_i32 : i32, i32
  }
  func.func @transform_1(%arg0: i32) -> (i32, i32) {
    %c0_i32 = arith.constant 0 : i32
    %c0_i32_0 = arith.constant 0 : i32
    %c0_i32_1 = arith.constant 0 : i32
    return %c0_i32, %c0_i32_0 : i32, i32
  }
  func.func @transform_2(%arg0: i32) -> (i32, i32) {
    %c0_i32 = arith.constant 0 : i32
    %c0_i32_0 = arith.constant 0 : i32
    %c0_i32_1 = arith.constant 0 : i32
    return %c0_i32, %c0_i32_0 : i32, i32
  }
  func.func @transform_3(%arg0: i32) -> (i32, i32) {
    %c0_i32 = arith.constant 0 : i32
    %c0_i32_0 = arith.constant 0 : i32
    %c0_i32_1 = arith.constant 0 : i32
    return %c0_i32, %c0_i32_0 : i32, i32
  }
  func.func @transform_4(%arg0: i32) -> (i32, i32) {
    %c0_i32 = arith.constant 0 : i32
    %c0_i32_0 = arith.constant 0 : i32
    %c0_i32_1 = arith.constant 0 : i32
    return %c0_i32, %c0_i32_0 : i32, i32
  }
  func.func @transform_5(%arg0: i32) -> (i32, i32) {
    %c0_i32 = arith.constant 0 : i32
    %c0_i32_0 = arith.constant 0 : i32
    %c0_i32_1 = arith.constant 0 : i32
    return %c0_i32, %c0_i32_0 : i32, i32
  }
  func.func @transform_6(%arg0: i32) -> (i32, i32) {
    %c0_i32 = arith.constant 0 : i32
    %c0_i32_0 = arith.constant 0 : i32
    %c0_i32_1 = arith.constant 0 : i32
    return %c0_i32, %c0_i32_0 : i32, i32
  }
  func.func @transform_7(%arg0: i32) -> (i32, i32) {
    %c0_i32 = arith.constant 0 : i32
    %c0_i32_0 = arith.constant 0 : i32
    return %arg0, %c0_i32 : i32, i32
  }
}

</mosaic_0001>

<bundles_post_ra>
// kernel: tpu_custom_call.1
= control target key start
LH: loop header
LB: loop body
LE: loop exit
PB: predicated region body
PF: predicated region fallthrough
CT: control target
= control target key end

     0   :  { %12 = vsyncpa [#allocation3], 0  ;;  %s841_s0 = inlined_call_operand.hbm [shape: bf16[16,32], index: 0, kind: input, shape index: {}]   ;;  %s842_s1 = inlined_call_operand.hbm [shape: bf16[32,128], index: 1, kind: input, shape index: {}]   ;;  %s843_s2 = inlined_call_operand.vmem [shape: f32[1,128], index: 2, kind: input, shape index: {}]   ;;  %s844_s3 = inlined_call_operand.hbm [shape: bf16[128,128], index: 3, kind: input, shape index: {}]   ;;  %s845_s4 = inlined_call_operand.vmem [shape: f32[1,128], index: 4, kind: input, shape index: {}]   ;;  %s846_s5 = inlined_call_operand.hbm [shape: bf16[128,128], index: 5, kind: input, shape index: {}]   ;;  %s847_s6 = inlined_call_operand.vmem [shape: f32[1,128], index: 6, kind: input, shape index: {}]   ;;  %s848_s7 = inlined_call_operand.hbm [shape: bf16[16,128], index: 7, kind: output, shape index: {}]  }
   0x1   :  { %13 = vsyncpa [#allocation6], 0 }
   0x2   :  { %14 = vsyncpa [#allocation9], 0 }
   0x3   :  { %15 = vsyncpa [#allocation4], 0  ;;  %s670_s24 = smov [#allocation5]   ;;  %s671_s26 = smov [#allocation2]  }
   0x4   :  { %s33_s25 = sshll.u32 %s670_s24, 4  ;;  %s21_s27 = sshll.u32 %s671_s26, 4  ;;  %s34_s25 = int_to_ptr.vmem [resolvable:$true] %s33_s25  ;;  %s719_s27 = int_to_ptr.vmem [resolvable:$true] %s21_s27 }
   0x5   :  { %s552_s30 = scalar_lea.hbm %s842_s1, 256 }
   0x6   :  { %p553_p0 = scmp.ne.s32.totalorder %s842_s1, %s552_s30  ;;  %p556_p1 = scmp.lt.u32.totalorder %s552_s30, %s842_s1 }
   0x8   :  { %p558_p2 = pnand %p556_p1, %p553_p0 }
   0xa   :  { %561 = shalt.err (!%p558_p2)
}
   0xb   :  { %s562_s12 = scalar_lea.vmem %s34_s25, 256  ;;  %p567_p4 = scmp.lt.s32.totalorder %s34_s25, %s34_s25 }
   0xc   :  { %p563_p3 = scmp.ne.s32.totalorder %s34_s25, %s562_s12  ;;  %p568_p5 = scmp.lt.s32.totalorder %s562_s12, %s562_s12 }
   0xe   :  { %p569_p6 = por %p568_p5, %p567_p4 }
  0x10   :  { %p570_p7 = pnand %p569_p6, %p563_p3 }
  0x12   :  { %573 = shalt.err (!%p570_p7)
}
  0x13   :  { %s672_s13 = smov 64   ;;  %s673_s14 = smov 4  }
  0x14   :  { %39 = dma.hbm_to_vmem [thread:$0]  %s842_s1, 256, %s34_s25, [#allocation6], %s672_s13, %s672_s13, %s673_s14  }
  0x15   :  { %s574_s19 = scalar_lea.hbm %s841_s0, 128 }
  0x16   :  { %p575_p8 = scmp.ne.s32.totalorder %s841_s0, %s574_s19  ;;  %p578_p9 = scmp.lt.u32.totalorder %s574_s19, %s841_s0 }
  0x18   :  { %p580_p10 = pnand %p578_p9, %p575_p8 }
  0x1a   :  { %583 = shalt.err (!%p580_p10)
}
  0x1b   :  { %s584_s24 = scalar_lea.vmem %s719_s27, 128  ;;  %p589_p12 = scmp.lt.s32.totalorder %s719_s27, %s719_s27 }
  0x1c   :  { %p585_p11 = scmp.ne.s32.totalorder %s719_s27, %s584_s24  ;;  %p590_p13 = scmp.lt.s32.totalorder %s584_s24, %s584_s24 }
  0x1e   :  { %p591_p0 = por %p590_p13, %p589_p12 }
  0x20   :  { %p592_p1 = pnand %p591_p0, %p585_p11 }
  0x22   :  { %595 = shalt.err (!%p592_p1)
}
  0x23   :  { %27 = dma.hbm_to_vmem [thread:$0]  %s841_s0, 128, %s719_s27, [#allocation3], %s672_s13, %s672_s13, %s673_s14  }
  0x24   :  { %s674_s26 = smov [#allocation7]   ;;  %s675_s29 = smov [#allocation8]  }
  0x25   :  { %s47_s28 = sshll.u32 %s674_s26, 4  ;;  %s61_s30 = sshll.u32 %s675_s29, 4  ;;  %s48_s28 = int_to_ptr.vmem [resolvable:$true] %s47_s28  ;;  %s756_s30 = int_to_ptr.vmem [resolvable:$true] %s61_s30 }
  0x26   :  { %s596_s10 = scalar_lea.hbm %s844_s3, 1024 }
  0x27   :  { %p597_p2 = scmp.ne.s32.totalorder %s844_s3, %s596_s10  ;;  %p600_p3 = scmp.lt.u32.totalorder %s596_s10, %s844_s3 }
  0x29   :  { %p602_p4 = pnand %p600_p3, %p597_p2 }
  0x2b   :  { %605 = shalt.err (!%p602_p4)
}
  0x2c   :  { %s606_s0 = scalar_lea.vmem %s48_s28, 1024  ;;  %p611_p6 = scmp.lt.s32.totalorder %s48_s28, %s48_s28 }
  0x2d   :  { %p607_p5 = scmp.ne.s32.totalorder %s48_s28, %s606_s0  ;;  %p612_p7 = scmp.lt.s32.totalorder %s606_s0, %s606_s0 }
  0x2f   :  { %p613_p8 = por %p612_p7, %p611_p6 }
  0x31   :  { %p614_p9 = pnand %p613_p8, %p607_p5 }
  0x33   :  { %617 = shalt.err (!%p614_p9)
}
  0x34   :  { %53 = dma.hbm_to_vmem [thread:$0]  %s844_s3, 1024, %s48_s28, [#allocation6], %s672_s13, %s672_s13, %s673_s14  }
  0x35   :  { %s618_s20 = scalar_lea.hbm %s846_s5, 1024 }
  0x36   :  { %p619_p10 = scmp.ne.s32.totalorder %s846_s5, %s618_s20  ;;  %p622_p11 = scmp.lt.u32.totalorder %s618_s20, %s846_s5 }
  0x38   :  { %p624_p12 = pnand %p622_p11, %p619_p10 }
  0x3a   :  { %627 = shalt.err (!%p624_p12)
}
  0x3b   :  { %s628_s1 = scalar_lea.vmem %s756_s30, 1024  ;;  %p633_p0 = scmp.lt.s32.totalorder %s756_s30, %s756_s30 }
  0x3c   :  { %p629_p13 = scmp.ne.s32.totalorder %s756_s30, %s628_s1  ;;  %p634_p1 = scmp.lt.s32.totalorder %s628_s1, %s628_s1 }
  0x3e   :  { %p635_p2 = por %p634_p1, %p633_p0 }
  0x40   :  { %p636_p3 = pnand %p635_p2, %p629_p13 }
  0x42   :  { %639 = shalt.err (!%p636_p3)
}
  0x43   :  { %67 = dma.hbm_to_vmem [thread:$0]  %s846_s5, 1024, %s756_s30, [#allocation9], %s672_s13, %s672_s13, %s673_s14  }
  0x44   :  { %662 = dma.done.wait [#allocation3], 128  }
  0x45   :  { %663 = vsyncadd [#allocation3], 4294967168 }
  0x46   :  { %664 = dma.done.wait [#allocation6], 1280  }
  0x47   :  { %665 = vsyncadd [#allocation6], 4294966016 }
  0x48   :  { %666 = dma.done.wait [#allocation9], 1024  }
  0x49   :  { %667 = vsyncadd [#allocation9], 4294966272  ;;  %v676_v0 = vmov 0.0   ;;  %vm677_vm0 = vmmov 0   ;;  %v529_v1 = vld [vmem:[#allocation5] sm:$0xff]   ;;  %v530_v2 = vld [vmem:[#allocation5 + $0x8] sm:$0xff]  }
  0x4a   :  { %472 = vmatprep.subr.bf16.mxu0 %v676_v0  ;;  %476 = vmatprep.mubr.msk.bf16.mxu0 %vm677_vm0, %v676_v0  ;;  %v532_v3 = vld [vmem:[#allocation7] sm:$0xff]   ;;  %v531_v4 = vld [vmem:[#allocation2] sm:$0xff]   ;;  %vm113_vm1 = vcmask 261120   ;;  %v534_v6 = vld [vmem:[#allocation7 + $0x10] sm:$0xff]  }
  0x4b   :  { %480 = vmatprep.subr.bf16.mxu1 %v676_v0  ;;  %496 = vmatprep.mubr.msk.bf16.mxu1 %vm677_vm0, %v676_v0  ;;  %v533_v5 = vld [vmem:[#allocation7 + $0x8] sm:$0xff]   ;;  %v535_v7 = vld [vmem:[#allocation7 + $0x18] sm:$0xff]   ;;  %v536_v8 = vld [vmem:[#allocation7 + $0x20] sm:$0xff]  }
  0x4c   :  { %473 = vmatpush3.bf16.msra.mxu0 %v529_v1  ;;  %481 = vmatpush3.bf16.msra.mxu1 %v532_v3  ;;  %v537_v9 = vld [vmem:[#allocation7 + $0x28] sm:$0xff]   ;;  %v538_v10 = vld [vmem:[#allocation7 + $0x30] sm:$0xff]   ;;  %v539_v11 = vld [vmem:[#allocation7 + $0x38] sm:$0xff]  }
  0x4d   :  { %474 = vmatprep.subr.bf16.mxu0 %v676_v0  ;;  %482 = vmatprep.subr.bf16.mxu1 %v676_v0  ;;  %v540_v12 = vld [vmem:[#allocation8] sm:$0xff]   ;;  %v541_v13 = vld [vmem:[#allocation8 + $0x8] sm:$0xff]   ;;  %v542_v14 = vld [vmem:[#allocation8 + $0x10] sm:$0xff]  }
  0x4e   :  { %v543_v15 = vld [vmem:[#allocation8 + $0x18] sm:$0xff]   ;;  %v544_v16 = vld [vmem:[#allocation8 + $0x20] sm:$0xff]   ;;  %v545_v17 = vld [vmem:[#allocation8 + $0x28] sm:$0xff]  }
  0x4f   :  { %v419_v18 = vld [vmem:[%s843_s2] ss:$0 sm:$0xff]  ;;  %v546_v28 = vld [vmem:[#allocation8 + $0x30] sm:$0xff]   ;;  %v547_v29 = vld [vmem:[#allocation8 + $0x38] sm:$0xff]  }
  0x50   :  { %475 = vmatpush3.bf16.msra.mxu0 %v530_v2  ;;  %483 = vmatpush3.bf16.msra.mxu1 %v533_v5  ;;  %v424_v30 = vld [vmem:[%s845_s4] ss:$0 sm:$0xff]  ;;  %s678_s4 = smov [#allocation10]  }
  0x51   :  { %500 = vmatprep.subr.bf16.mxu0 %v676_v0  ;;  %484 = vmatprep.subr.bf16.mxu1 %v676_v0  ;;  %v433_v40 = vld [vmem:[%s847_s6] ss:$0 sm:$0xff]  ;;  %s405_s8 = sshll.u32 %s678_s4, 4  ;;  %s406_s8 = int_to_ptr.vmem [resolvable:$true] %s405_s8 }
  0x52   :  { %s640_s9 = scalar_lea.vmem %s406_s8, 128  ;;  %p645_p5 = scmp.lt.s32.totalorder %s406_s8, %s406_s8 }
  0x53   :  { %477 = vmatmul.mubr.msk.bf16.vlgmr.msra.gmra.mrb[0].mxu0 %vm113_vm1, %v531_v4  ;;  %p641_p4 = scmp.ne.s32.totalorder %s406_s8, %s640_s9  ;;  %p646_p6 = scmp.lt.s32.totalorder %s640_s9, %s640_s9 }
  0x54   :  { %516 = vmatprep.mubr.msk.bf16.mxu0 %vm677_vm0, %v676_v0  ;;  %485 = vmatpush3.bf16.msra.mxu1 %v534_v6 }
  0x55   :  { %486 = vmatprep.subr.bf16.mxu1 %v676_v0  ;;  %501 = vmatpush3.bf16.msra.mxu0 %v540_v12  ;;  %p647_p7 = por %p646_p6, %p645_p5 }
  0x56   :  { %502 = vmatprep.subr.bf16.mxu0 %v676_v0 }
  0x57   :  { %p648_p8 = pnand %p647_p7, %p641_p4 }
  0x58   :  { %487 = vmatpush3.bf16.msra.mxu1 %v535_v7 }
  0x59   :  { %488 = vmatprep.subr.bf16.mxu1 %v676_v0  ;;  %503 = vmatpush3.bf16.msra.mxu0 %v541_v13 }
  0x5a   :  { %504 = vmatprep.subr.bf16.mxu0 %v676_v0 }
  0x5c   :  { %489 = vmatpush3.bf16.msra.mxu1 %v536_v8 }
  0x5d   :  { %490 = vmatprep.subr.bf16.mxu1 %v676_v0  ;;  %505 = vmatpush3.bf16.msra.mxu0 %v542_v14 }
  0x5e   :  { %506 = vmatprep.subr.bf16.mxu0 %v676_v0 }
  0x60   :  { %491 = vmatpush3.bf16.msra.mxu1 %v537_v9 }
  0x61   :  { %492 = vmatprep.subr.bf16.mxu1 %v676_v0  ;;  %507 = vmatpush3.bf16.msra.mxu0 %v543_v15 }
  0x62   :  { %508 = vmatprep.subr.bf16.mxu0 %v676_v0 }
  0x64   :  { %493 = vmatpush3.bf16.msra.mxu1 %v538_v10 }
  0x65   :  { %494 = vmatprep.subr.bf16.mxu1 %v676_v0  ;;  %509 = vmatpush3.bf16.msra.mxu0 %v544_v16 }
  0x66   :  { %510 = vmatprep.subr.bf16.mxu0 %v676_v0 }
  0x68   :  { %495 = vmatpush3.bf16.msra.mxu1 %v539_v11 }
  0x69   :  { %511 = vmatpush3.bf16.msra.mxu0 %v545_v17 }
  0x6a   :  { %512 = vmatprep.subr.bf16.mxu0 %v676_v0 }
  0x6d   :  { %513 = vmatpush3.bf16.msra.mxu0 %v546_v28 }
  0x6e   :  { %514 = vmatprep.subr.bf16.mxu0 %v676_v0 }
  0x71   :  { %515 = vmatpush3.bf16.msra.mxu0 %v547_v29 }
 0x126   :  { %v151_v19 = vpop.f32.mrb[0].mxu0 }
 0x127   :  { %v152_v20 = vadd.f32 %v419_v18, %v151_v19  ;;  %v478_v21 = vpop.f32.mrb[1].mxu0 }
 0x128   :  { %v154_v22 = vpop.f32.mrb[2].mxu0 }
 0x129   :  { %v155_v23 = vadd.f32 %v419_v18, %v154_v22  ;;  %v479_v24 = vpop.f32.mrb[3].mxu0  ;;  %v158_v25 = vmax.f32 %v152_v20, 0.0 }
 0x12b   :  { %v159_v26 = vmax.f32 %v155_v23, 0.0 }
 0x12d   :  { %v160_v27 = vpack.c.bf16 %v159_v26, %v158_v25 }
 0x12f   :  { %497 = vmatmul.mubr.bf16.vlgmr.msra.gmra.mrb[0].mxu1 %v160_v27 }
 0x202   :  { %v266_v31 = vpop.f32.mrb[0].mxu1 }
 0x203   :  { %v267_v32 = vadd.f32 %v424_v30, %v266_v31  ;;  %v498_v33 = vpop.f32.mrb[1].mxu1 }
 0x204   :  { %v269_v34 = vpop.f32.mrb[2].mxu1 }
 0x205   :  { %v270_v35 = vadd.f32 %v424_v30, %v269_v34  ;;  %v499_v36 = vpop.f32.mrb[3].mxu1  ;;  %v273_v37 = vmax.f32 %v267_v32, 0.0 }
 0x207   :  { %v274_v38 = vmax.f32 %v270_v35, 0.0 }
 0x209   :  { %v275_v39 = vpack.c.bf16 %v274_v38, %v273_v37 }
 0x20b   :  { %517 = vmatmul.mubr.bf16.vlgmr.msra.gmra.mrb[4].mxu0 %v275_v39 }
 0x2de   :  { %v381_v41 = vpop.f32.mrb[4].mxu0 }
 0x2df   :  { %v382_v42 = vadd.f32 %v433_v40, %v381_v41  ;;  %v518_v43 = vpop.f32.mrb[5].mxu0 }
 0x2e0   :  { %v384_v44 = vpop.f32.mrb[6].mxu0 }
 0x2e1   :  { %v385_v45 = vadd.f32 %v433_v40, %v384_v44  ;;  %v519_v46 = vpop.f32.mrb[7].mxu0  ;;  %548 = vtanh.f32 %v382_v42 }
 0x2e3   :  { %550 = vtanh.f32 %v385_v45 }
 0x2eb   :  { %v549_v47 = vpop.eup %548 }
 0x2ed   :  { %v551_v48 = vpop.eup %550 }
 0x2ee   :  { %v449_v49 = vpack.c.bf16 %v551_v48, %v549_v47 }
 0x2f0   :  { %450 = vst [vmem:[#allocation10] sm:$0xff] %v449_v49  }
 0x2f1   :  { %651 = shalt.err (!%p648_p8)
}
 0x2f2   :  { %s652_s11 = scalar_lea.hbm %s848_s7, 128 }
 0x2f3   :  { %p653_p9 = scmp.ne.s32.totalorder %s848_s7, %s652_s11  ;;  %p656_p10 = scmp.lt.u32.totalorder %s652_s11, %s848_s7 }
 0x2f5   :  { %p658_p11 = pnand %p656_p10, %p653_p9 }
 0x2f7   :  { %661 = shalt.err (!%p658_p11)
}
 0x2f8   :  { %411 = dma.vmem_to_hbm [thread:$0]  %s406_s8, 128, %s848_s7, [#allocation4], %s672_s13, %s672_s13, %s673_s14  }
 0x2f9   :  { %668 = dma.done.wait [#allocation4], 128  }
 0x2fa   :  { %669 = vsyncadd [#allocation4], 4294967168 }
 0x2fb   :  { %415 = vsyncpa [#allocation3], 1 }
 0x2fc   :  { %416 = vsyncpa [#allocation6], 1 }
 0x2fd   :  { %417 = vsyncpa [#allocation9], 1 }
 0x2fe   :  { %418 = vsyncpa [#allocation4], 1 }

</bundles_post_ra>
